<compile_context>
chip_gen: v7x
topology: tpu7x:2x2x1
jax: 0.10.0
libtpu: 0.0.40
codegen_flags: <defaults>
</compile_context>

<pallas_src>
import functools

import jax
import jax.numpy as jnp
from jax.experimental import pallas as pl
from jax.experimental.pallas import tpu as pltpu

# Module hyper-parameters (consistent with the nn.RNN signature).
INPUT_DIM = 16
HIDDEN_DIM = 32
N_LAYERS = 2
_SUBLANE = 8  # f32 sublane height


def _encoder_kernel(*refs, seq_len, batch_pad, hidden_dim, n_layers):
    """Fused, wavefronted multi-layer tanh-RNN encoder (one kernel invocation).

    refs layout (inputs, then outputs, then scratch):
      refs[0]                      x_ref    (S*B_pad, D_in)   time-major
      refs[1]                      w_ih0_t  (D_in, H)
      refs[2]                      w_hh0_t  (H, H)
      refs[3]                      b0       (1, H)            (b_ih + b_hh)
      refs[4 + 2*(l-1) + 0]        wc_l     (2H, H)   [W_ih_l^T ; W_hh_l^T]
      refs[4 + 2*(l-1) + 1]        b_l      (1, H)
      refs[4 + 2*(n_layers-1)]     hid_ref  (n_layers, B_pad, H)   output
      refs[5 + 2*(n_layers-1)]     proj_ref (S*B_pad, H)            scratch
    """
    x_ref = refs[0]
    wih0_ref, whh0_ref, b0_ref = refs[1], refs[2], refs[3]
    layer_refs = refs[4:4 + 2 * (n_layers - 1)]
    hid_ref = refs[4 + 2 * (n_layers - 1)]
    proj_ref = refs[5 + 2 * (n_layers - 1)]

    # Hoisted layer-0 input projection: one MXU matmul for every timestep.
    proj_ref[...] = (
        jnp.dot(x_ref[...], wih0_ref[...], preferred_element_type=jnp.float32)
        + b0_ref[...]
    )

    # Weights read once; they live in vregs across the unrolled recurrence.
    whh0 = whh0_ref[...]
    wcs = [layer_refs[2 * i][...] for i in range(n_layers - 1)]      # (2H, H)
    bls = [layer_refs[2 * i + 1][...] for i in range(n_layers - 1)]  # (1, H)

    def proj0(t):
        # batch_pad is a multiple of 8, t is static -> aligned full-sublane load
        return proj_ref[pl.ds(t * batch_pad, batch_pad), :]

    # Zero initial hidden state (nn.RNN default).
    h = [jnp.zeros((batch_pad, hidden_dim), jnp.float32)
         for _ in range(n_layers)]

    # Wavefront over (layer, timestep) anti-diagonals.  Within a diagonal the
    # layers are visited from deepest to shallowest so each layer l consumes
    # h[l-1] from the previous diagonal (i.e. its own timestep's input) before
    # it is overwritten.  All steps on one diagonal are mutually independent,
    # so MXU pushes of one overlap the EUP tanh of another.
    for d in range(seq_len + n_layers - 1):
        for layer in reversed(range(n_layers)):
            t = d - layer
            if not (0 <= t < seq_len):
                continue
            if layer == 0:
                pre = proj0(t)
                if t > 0:  # h0_{-1} == 0: skip the dead recurrent matmul
                    pre = pre + jnp.dot(h[0], whh0,
                                        preferred_element_type=jnp.float32)
            else:
                # Single (B, 2H) @ (2H, H) push folds the per-step input add
                # into the recurrence matmul.  (h[layer] == 0 at t == 0, which
                # reproduces the zero initial hidden state exactly.)
                pre = jnp.dot(
                    jnp.concatenate([h[layer - 1], h[layer]], axis=-1),
                    wcs[layer - 1],
                    preferred_element_type=jnp.float32) + bls[layer - 1]
            h[layer] = jnp.tanh(pre)

    for layer in range(n_layers):
        hid_ref[layer] = h[layer].astype(hid_ref.dtype)


def _encoder_pallas(x_flat, packed_params, *, seq_len, batch_pad, input_dim,
                    hidden_dim, n_layers):
    """Single pallas_call running the whole encoder (all layers, all steps)."""
    in_specs = [
        pl.BlockSpec((seq_len * batch_pad, input_dim), lambda i: (0, 0)),
        pl.BlockSpec((input_dim, hidden_dim), lambda i: (0, 0)),
        pl.BlockSpec((hidden_dim, hidden_dim), lambda i: (0, 0)),
        pl.BlockSpec((1, hidden_dim), lambda i: (0, 0)),
    ]
    for _ in range(n_layers - 1):
        in_specs += [
            pl.BlockSpec((2 * hidden_dim, hidden_dim), lambda i: (0, 0)),
            pl.BlockSpec((1, hidden_dim), lambda i: (0, 0)),
        ]

    kernel = functools.partial(
        _encoder_kernel,
        seq_len=seq_len,
        batch_pad=batch_pad,
        hidden_dim=hidden_dim,
        n_layers=n_layers,
    )

    return pl.pallas_call(
        kernel,
        out_shape=jax.ShapeDtypeStruct((n_layers, batch_pad, hidden_dim),
                                       jnp.float32),
        grid_spec=pltpu.PrefetchScalarGridSpec(
            num_scalar_prefetch=0,
            grid=(1,),  # fully VMEM resident: one program, no pipelining
            in_specs=in_specs,
            out_specs=pl.BlockSpec((n_layers, batch_pad, hidden_dim),
                                   lambda i: (0, 0, 0)),
            scratch_shapes=[
                # hoisted layer-0 projection, sublane-aligned per-step slabs
                pltpu.VMEM((seq_len * batch_pad, hidden_dim), jnp.float32),
            ],
        ),
        compiler_params=pltpu.CompilerParams(
            dimension_semantics=("arbitrary",),
        ),
    )(x_flat, *packed_params)


def init_encoder_params(key, input_dim=INPUT_DIM, hidden_dim=HIDDEN_DIM,
                        n_layers=N_LAYERS):
    """Deterministic init matching nn.RNN shapes: U(-1/sqrt(H), 1/sqrt(H))."""
    bound = 1.0 / jnp.sqrt(jnp.float32(hidden_dim))
    params = []
    for layer in range(n_layers):
        d_in = input_dim if layer == 0 else hidden_dim
        key, k1, k2, k3, k4 = jax.random.split(key, 5)
        params.append(dict(
            w_ih=jax.random.uniform(k1, (hidden_dim, d_in), jnp.float32,
                                    -bound, bound),
            w_hh=jax.random.uniform(k2, (hidden_dim, hidden_dim), jnp.float32,
                                    -bound, bound),
            b_ih=jax.random.uniform(k3, (hidden_dim,), jnp.float32,
                                    -bound, bound),
            b_hh=jax.random.uniform(k4, (hidden_dim,), jnp.float32,
                                    -bound, bound),
        ))
    return params


def pack_kernel_params(params):
    """PyTorch-layout params -> kernel-ready tensors.

    Layer 0:   w_ih^T (D, H), w_hh^T (H, H), bias (1, H)
    Layer l>0: wc = [w_ih^T ; w_hh^T] (2H, H), bias (1, H)   (wavefront fold)
    """
    hidden_dim = params[0]["w_hh"].shape[0]
    p0 = params[0]
    packed = [
        p0["w_ih"].T,
        p0["w_hh"].T,
        (p0["b_ih"] + p0["b_hh"]).reshape(1, hidden_dim),
    ]
    for p in params[1:]:
        packed += [
            jnp.concatenate([p["w_ih"].T, p["w_hh"].T], axis=0),  # (2H, H)
            (p["b_ih"] + p["b_hh"]).reshape(1, hidden_dim),
        ]
    return tuple(packed)


@jax.jit
def encoder_forward(src, packed_params):
    """Equivalent of Encoder.forward(src).

    src: (batch, seq, INPUT_DIM)  -- batch_first, like the PyTorch module.
    returns hidden: (N_LAYERS, batch, HIDDEN_DIM)
    """
    batch, seq_len, input_dim = src.shape
    hidden_dim = packed_params[1].shape[0]
    n_layers = (len(packed_params) - 3) // 2 + 1

    # Pad batch to a full sublane and go time-major so every per-step VMEM
    # access inside the kernel is an unmasked full-sublane slab.  (Tiny op at
    # these sizes; at scale this reorder should move into VMEM.)
    b_pad = ((batch + _SUBLANE - 1) // _SUBLANE) * _SUBLANE
    src_p = jnp.pad(src, ((0, b_pad - batch), (0, 0), (0, 0)))
    x_flat = jnp.transpose(src_p, (1, 0, 2)).reshape(seq_len * b_pad, input_dim)

    hid = _encoder_pallas(
        x_flat, packed_params,
        seq_len=seq_len, batch_pad=b_pad,
        input_dim=input_dim, hidden_dim=hidden_dim, n_layers=n_layers,
    )
    return hid[:, :batch, :]


def _reference_forward(src, params):
    """Pure-JAX reference (lax.scan per layer) for a correctness check."""
    x = jnp.transpose(src, (1, 0, 2))  # time-major
    batch = src.shape[0]
    hidden_dim = params[0]["w_hh"].shape[0]
    hiddens = []
    for p in params:
        w_ih_t, w_hh_t = p["w_ih"].T, p["w_hh"].T
        bias = p["b_ih"] + p["b_hh"]

        def step(h, x_t, w_ih_t=w_ih_t, w_hh_t=w_hh_t, bias=bias):
            h_new = jnp.tanh(x_t @ w_ih_t + h @ w_hh_t + bias)
            return h_new, h_new

        h0 = jnp.zeros((batch, hidden_dim), jnp.float32)
        h_last, outs = jax.lax.scan(step, h0, x)
        hiddens.append(h_last)
        x = outs
    return jnp.stack(hiddens, axis=0)


if __name__ == "__main__":
    key = jax.random.PRNGKey(0)
    k_param, k_data = jax.random.split(key)

    batch, seq = 2, 8
    src = jax.random.normal(k_data, (batch, seq, INPUT_DIM), jnp.float32)

    params = init_encoder_params(k_param)
    packed = pack_kernel_params(params)

    hidden = encoder_forward(src, packed)
    jax.block_until_ready(hidden)

    assert hidden.shape == (N_LAYERS, batch, HIDDEN_DIM), hidden.shape

    ref = _reference_forward(src, params)
    assert jnp.allclose(hidden, ref, atol=1e-5, rtol=1e-5), (
        float(jnp.max(jnp.abs(hidden - ref)))
    )

    print("KERNEL_OK")
</pallas_src>

<mosaic_0001>
module attributes {stable_mosaic.version = 11 : i64} {
  func.func @_encoder_kernel(%arg0: i32, %arg1: memref<64x16xf32, #tpu.memory_space<vmem>>, %arg2: memref<16x32xf32, #tpu.memory_space<vmem>>, %arg3: memref<32x32xf32, #tpu.memory_space<vmem>>, %arg4: memref<1x32xf32, #tpu.memory_space<vmem>>, %arg5: memref<64x32xf32, #tpu.memory_space<vmem>>, %arg6: memref<1x32xf32, #tpu.memory_space<vmem>>, %arg7: memref<2x8x32xf32, #tpu.memory_space<vmem>>, %arg8: memref<64x32xf32, #tpu.memory_space<vmem>>) attributes {dimension_semantics = [#tpu.dimension_semantics<arbitrary>], iteration_bounds = array<i64: 1>, scalar_prefetch = 0 : i64, scratch_operands = 1 : i64, tpu.core_type = #tpu.core_type<tc>, window_params = [{pipeline_mode = #tpu.pipeline_mode<synchronous>, transform_indices = @transform_0, window_bounds = array<i64: 64, 16>}, {pipeline_mode = #tpu.pipeline_mode<synchronous>, transform_indices = @transform_1, window_bounds = array<i64: 16, 32>}, {pipeline_mode = #tpu.pipeline_mode<synchronous>, transform_indices = @transform_2, window_bounds = array<i64: 32, 32>}, {pipeline_mode = #tpu.pipeline_mode<synchronous>, transform_indices = @transform_3, window_bounds = array<i64: 1, 32>}, {pipeline_mode = #tpu.pipeline_mode<synchronous>, transform_indices = @transform_4, window_bounds = array<i64: 64, 32>}, {pipeline_mode = #tpu.pipeline_mode<synchronous>, transform_indices = @transform_5, window_bounds = array<i64: 1, 32>}, {pipeline_mode = #tpu.pipeline_mode<synchronous>, transform_indices = @transform_6, window_bounds = array<i64: 2, 8, 32>}]} {
    %c0 = arith.constant 0 : index
    %c0_0 = arith.constant 0 : index
    %0 = vector.load %arg1[%c0, %c0_0] : memref<64x16xf32, #tpu.memory_space<vmem>>, vector<64x16xf32>
    %c0_1 = arith.constant 0 : index
    %c0_2 = arith.constant 0 : index
    %1 = vector.load %arg2[%c0_1, %c0_2] : memref<16x32xf32, #tpu.memory_space<vmem>>, vector<16x32xf32>
    %cst = arith.constant dense<0.000000e+00> : vector<64x32xf32>
    %2 = tpu.matmul %0, %1, %cst {dimension_numbers = #tpu.dot_dimension_numbers<[1], [0], [0], [1], [0, 0, 1, 1], [], []>} : vector<64x16xf32>, vector<16x32xf32>, vector<64x32xf32> -> vector<64x32xf32>
    %c0_3 = arith.constant 0 : index
    %c0_4 = arith.constant 0 : index
    %3 = vector.load %arg4[%c0_3, %c0_4] : memref<1x32xf32, #tpu.memory_space<vmem>>, vector<1x32xf32>
    %4 = vector.broadcast %3 : vector<1x32xf32> to vector<64x32xf32>
    %5 = arith.addf %2, %4 : vector<64x32xf32>
    %c0_5 = arith.constant 0 : index
    %c0_6 = arith.constant 0 : index
    %6 = vector.load %arg8[%c0_5, %c0_6] : memref<64x32xf32, #tpu.memory_space<vmem>>, vector<64x32xf32>
    tpu.vector_store %arg8[%c0_5, %c0_6], %5 {strides = array<i32>} : memref<64x32xf32, #tpu.memory_space<vmem>>, vector<64x32xf32>,
    %c0_7 = arith.constant 0 : index
    %c0_8 = arith.constant 0 : index
    %7 = vector.load %arg3[%c0_7, %c0_8] : memref<32x32xf32, #tpu.memory_space<vmem>>, vector<32x32xf32>
    %c0_9 = arith.constant 0 : index
    %c0_10 = arith.constant 0 : index
    %8 = vector.load %arg5[%c0_9, %c0_10] : memref<64x32xf32, #tpu.memory_space<vmem>>, vector<64x32xf32>
    %c0_11 = arith.constant 0 : index
    %c0_12 = arith.constant 0 : index
    %9 = vector.load %arg6[%c0_11, %c0_12] : memref<1x32xf32, #tpu.memory_space<vmem>>, vector<1x32xf32>
    %cst_13 = arith.constant 0.000000e+00 : f32
    %10 = vector.broadcast %cst_13 : f32 to vector<8x32xf32>
    %c0_14 = arith.constant 0 : index
    %c0_15 = arith.constant 0 : index
    %11 = vector.load %arg8[%c0_14, %c0_15] : memref<64x32xf32, #tpu.memory_space<vmem>>, vector<8x32xf32>
    %12 = math.tanh %11 : vector<8x32xf32>
    %13 = tpu.concatenate %12, %10 in 1 : vector<8x32xf32>, vector<8x32xf32> -> vector<8x64xf32>
    %cst_16 = arith.constant dense<0.000000e+00> : vector<8x32xf32>
    %14 = tpu.matmul %13, %8, %cst_16 {dimension_numbers = #tpu.dot_dimension_numbers<[1], [0], [0], [1], [0, 0, 1, 1], [], []>} : vector<8x64xf32>, vector<64x32xf32>, vector<8x32xf32> -> vector<8x32xf32>
    %15 = vector.broadcast %9 : vector<1x32xf32> to vector<8x32xf32>
    %16 = arith.addf %14, %15 : vector<8x32xf32>
    %17 = math.tanh %16 : vector<8x32xf32>
    %c8 = arith.constant 8 : index
    %c0_17 = arith.constant 0 : index
    %18 = vector.load %arg8[%c8, %c0_17] : memref<64x32xf32, #tpu.memory_space<vmem>>, vector<8x32xf32>
    %cst_18 = arith.constant dense<0.000000e+00> : vector<8x32xf32>
    %19 = tpu.matmul %12, %7, %cst_18 {dimension_numbers = #tpu.dot_dimension_numbers<[1], [0], [0], [1], [0, 0, 1, 1], [], []>} : vector<8x32xf32>, vector<32x32xf32>, vector<8x32xf32> -> vector<8x32xf32>
    %20 = arith.addf %18, %19 : vector<8x32xf32>
    %21 = math.tanh %20 : vector<8x32xf32>
    %22 = tpu.concatenate %21, %17 in 1 : vector<8x32xf32>, vector<8x32xf32> -> vector<8x64xf32>
    %cst_19 = arith.constant dense<0.000000e+00> : vector<8x32xf32>
    %23 = tpu.matmul %22, %8, %cst_19 {dimension_numbers = #tpu.dot_dimension_numbers<[1], [0], [0], [1], [0, 0, 1, 1], [], []>} : vector<8x64xf32>, vector<64x32xf32>, vector<8x32xf32> -> vector<8x32xf32>
    %24 = vector.broadcast %9 : vector<1x32xf32> to vector<8x32xf32>
    %25 = arith.addf %23, %24 : vector<8x32xf32>
    %26 = math.tanh %25 : vector<8x32xf32>
    %c16 = arith.constant 16 : index
    %c0_20 = arith.constant 0 : index
    %27 = vector.load %arg8[%c16, %c0_20] : memref<64x32xf32, #tpu.memory_space<vmem>>, vector<8x32xf32>
    %cst_21 = arith.constant dense<0.000000e+00> : vector<8x32xf32>
    %28 = tpu.matmul %21, %7, %cst_21 {dimension_numbers = #tpu.dot_dimension_numbers<[1], [0], [0], [1], [0, 0, 1, 1], [], []>} : vector<8x32xf32>, vector<32x32xf32>, vector<8x32xf32> -> vector<8x32xf32>
    %29 = arith.addf %27, %28 : vector<8x32xf32>
    %30 = math.tanh %29 : vector<8x32xf32>
    %31 = tpu.concatenate %30, %26 in 1 : vector<8x32xf32>, vector<8x32xf32> -> vector<8x64xf32>
    %cst_22 = arith.constant dense<0.000000e+00> : vector<8x32xf32>
    %32 = tpu.matmul %31, %8, %cst_22 {dimension_numbers = #tpu.dot_dimension_numbers<[1], [0], [0], [1], [0, 0, 1, 1], [], []>} : vector<8x64xf32>, vector<64x32xf32>, vector<8x32xf32> -> vector<8x32xf32>
    %33 = vector.broadcast %9 : vector<1x32xf32> to vector<8x32xf32>
    %34 = arith.addf %32, %33 : vector<8x32xf32>
    %35 = math.tanh %34 : vector<8x32xf32>
    %c24 = arith.constant 24 : index
    %c0_23 = arith.constant 0 : index
    %36 = vector.load %arg8[%c24, %c0_23] : memref<64x32xf32, #tpu.memory_space<vmem>>, vector<8x32xf32>
    %cst_24 = arith.constant dense<0.000000e+00> : vector<8x32xf32>
    %37 = tpu.matmul %30, %7, %cst_24 {dimension_numbers = #tpu.dot_dimension_numbers<[1], [0], [0], [1], [0, 0, 1, 1], [], []>} : vector<8x32xf32>, vector<32x32xf32>, vector<8x32xf32> -> vector<8x32xf32>
    %38 = arith.addf %36, %37 : vector<8x32xf32>
    %39 = math.tanh %38 : vector<8x32xf32>
    %40 = tpu.concatenate %39, %35 in 1 : vector<8x32xf32>, vector<8x32xf32> -> vector<8x64xf32>
    %cst_25 = arith.constant dense<0.000000e+00> : vector<8x32xf32>
    %41 = tpu.matmul %40, %8, %cst_25 {dimension_numbers = #tpu.dot_dimension_numbers<[1], [0], [0], [1], [0, 0, 1, 1], [], []>} : vector<8x64xf32>, vector<64x32xf32>, vector<8x32xf32> -> vector<8x32xf32>
    %42 = vector.broadcast %9 : vector<1x32xf32> to vector<8x32xf32>
    %43 = arith.addf %41, %42 : vector<8x32xf32>
    %44 = math.tanh %43 : vector<8x32xf32>
    %c32 = arith.constant 32 : index
    %c0_26 = arith.constant 0 : index
    %45 = vector.load %arg8[%c32, %c0_26] : memref<64x32xf32, #tpu.memory_space<vmem>>, vector<8x32xf32>
    %cst_27 = arith.constant dense<0.000000e+00> : vector<8x32xf32>
    %46 = tpu.matmul %39, %7, %cst_27 {dimension_numbers = #tpu.dot_dimension_numbers<[1], [0], [0], [1], [0, 0, 1, 1], [], []>} : vector<8x32xf32>, vector<32x32xf32>, vector<8x32xf32> -> vector<8x32xf32>
    %47 = arith.addf %45, %46 : vector<8x32xf32>
    %48 = math.tanh %47 : vector<8x32xf32>
    %49 = tpu.concatenate %48, %44 in 1 : vector<8x32xf32>, vector<8x32xf32> -> vector<8x64xf32>
    %cst_28 = arith.constant dense<0.000000e+00> : vector<8x32xf32>
    %50 = tpu.matmul %49, %8, %cst_28 {dimension_numbers = #tpu.dot_dimension_numbers<[1], [0], [0], [1], [0, 0, 1, 1], [], []>} : vector<8x64xf32>, vector<64x32xf32>, vector<8x32xf32> -> vector<8x32xf32>
    %51 = vector.broadcast %9 : vector<1x32xf32> to vector<8x32xf32>
    %52 = arith.addf %50, %51 : vector<8x32xf32>
    %53 = math.tanh %52 : vector<8x32xf32>
    %c40 = arith.constant 40 : index
    %c0_29 = arith.constant 0 : index
    %54 = vector.load %arg8[%c40, %c0_29] : memref<64x32xf32, #tpu.memory_space<vmem>>, vector<8x32xf32>
    %cst_30 = arith.constant dense<0.000000e+00> : vector<8x32xf32>
    %55 = tpu.matmul %48, %7, %cst_30 {dimension_numbers = #tpu.dot_dimension_numbers<[1], [0], [0], [1], [0, 0, 1, 1], [], []>} : vector<8x32xf32>, vector<32x32xf32>, vector<8x32xf32> -> vector<8x32xf32>
    %56 = arith.addf %54, %55 : vector<8x32xf32>
    %57 = math.tanh %56 : vector<8x32xf32>
    %58 = tpu.concatenate %57, %53 in 1 : vector<8x32xf32>, vector<8x32xf32> -> vector<8x64xf32>
    %cst_31 = arith.constant dense<0.000000e+00> : vector<8x32xf32>
    %59 = tpu.matmul %58, %8, %cst_31 {dimension_numbers = #tpu.dot_dimension_numbers<[1], [0], [0], [1], [0, 0, 1, 1], [], []>} : vector<8x64xf32>, vector<64x32xf32>, vector<8x32xf32> -> vector<8x32xf32>
    %60 = vector.broadcast %9 : vector<1x32xf32> to vector<8x32xf32>
    %61 = arith.addf %59, %60 : vector<8x32xf32>
    %62 = math.tanh %61 : vector<8x32xf32>
    %c48 = arith.constant 48 : index
    %c0_32 = arith.constant 0 : index
    %63 = vector.load %arg8[%c48, %c0_32] : memref<64x32xf32, #tpu.memory_space<vmem>>, vector<8x32xf32>
    %cst_33 = arith.constant dense<0.000000e+00> : vector<8x32xf32>
    %64 = tpu.matmul %57, %7, %cst_33 {dimension_numbers = #tpu.dot_dimension_numbers<[1], [0], [0], [1], [0, 0, 1, 1], [], []>} : vector<8x32xf32>, vector<32x32xf32>, vector<8x32xf32> -> vector<8x32xf32>
    %65 = arith.addf %63, %64 : vector<8x32xf32>
    %66 = math.tanh %65 : vector<8x32xf32>
    %67 = tpu.concatenate %66, %62 in 1 : vector<8x32xf32>, vector<8x32xf32> -> vector<8x64xf32>
    %cst_34 = arith.constant dense<0.000000e+00> : vector<8x32xf32>
    %68 = tpu.matmul %67, %8, %cst_34 {dimension_numbers = #tpu.dot_dimension_numbers<[1], [0], [0], [1], [0, 0, 1, 1], [], []>} : vector<8x64xf32>, vector<64x32xf32>, vector<8x32xf32> -> vector<8x32xf32>
    %69 = vector.broadcast %9 : vector<1x32xf32> to vector<8x32xf32>
    %70 = arith.addf %68, %69 : vector<8x32xf32>
    %71 = math.tanh %70 : vector<8x32xf32>
    %c56 = arith.constant 56 : index
    %c0_35 = arith.constant 0 : index
    %72 = vector.load %arg8[%c56, %c0_35] : memref<64x32xf32, #tpu.memory_space<vmem>>, vector<8x32xf32>
    %cst_36 = arith.constant dense<0.000000e+00> : vector<8x32xf32>
    %73 = tpu.matmul %66, %7, %cst_36 {dimension_numbers = #tpu.dot_dimension_numbers<[1], [0], [0], [1], [0, 0, 1, 1], [], []>} : vector<8x32xf32>, vector<32x32xf32>, vector<8x32xf32> -> vector<8x32xf32>
    %74 = arith.addf %72, %73 : vector<8x32xf32>
    %75 = math.tanh %74 : vector<8x32xf32>
    %76 = tpu.concatenate %75, %71 in 1 : vector<8x32xf32>, vector<8x32xf32> -> vector<8x64xf32>
    %cst_37 = arith.constant dense<0.000000e+00> : vector<8x32xf32>
    %77 = tpu.matmul %76, %8, %cst_37 {dimension_numbers = #tpu.dot_dimension_numbers<[1], [0], [0], [1], [0, 0, 1, 1], [], []>} : vector<8x64xf32>, vector<64x32xf32>, vector<8x32xf32> -> vector<8x32xf32>
    %78 = vector.broadcast %9 : vector<1x32xf32> to vector<8x32xf32>
    %79 = arith.addf %77, %78 : vector<8x32xf32>
    %80 = math.tanh %79 : vector<8x32xf32>
    %c0_38 = arith.constant 0 : index
    %c0_39 = arith.constant 0 : index
    %c0_40 = arith.constant 0 : index
    %81 = vector.load %arg7[%c0_38, %c0_39, %c0_40] : memref<2x8x32xf32, #tpu.memory_space<vmem>>, vector<1x8x32xf32>
    %82 = vector.shape_cast %81 : vector<1x8x32xf32> to vector<8x32xf32>
    %83 = vector.shape_cast %75 : vector<8x32xf32> to vector<1x8x32xf32>
    tpu.vector_store %arg7[%c0_38, %c0_39, %c0_40], %83 {strides = array<i32>} : memref<2x8x32xf32, #tpu.memory_space<vmem>>, vector<1x8x32xf32>,
    %c1 = arith.constant 1 : index
    %c0_41 = arith.constant 0 : index
    %c0_42 = arith.constant 0 : index
    %84 = vector.load %arg7[%c1, %c0_41, %c0_42] : memref<2x8x32xf32, #tpu.memory_space<vmem>>, vector<1x8x32xf32>
    %85 = vector.shape_cast %84 : vector<1x8x32xf32> to vector<8x32xf32>
    %86 = vector.shape_cast %80 : vector<8x32xf32> to vector<1x8x32xf32>
    tpu.vector_store %arg7[%c1, %c0_41, %c0_42], %86 {strides = array<i32>} : memref<2x8x32xf32, #tpu.memory_space<vmem>>, vector<1x8x32xf32>,
    return
  }
  func.func @transform_0(%arg0: i32) -> (i32, i32) {
    %c0_i32 = arith.constant 0 : i32
    %c0_i32_0 = arith.constant 0 : i32
    %c0_i32_1 = arith.constant 0 : i32
    return %c0_i32, %c0_i32_0 : i32, i32
  }
  func.func @transform_1(%arg0: i32) -> (i32, i32) {
    %c0_i32 = arith.constant 0 : i32
    %c0_i32_0 = arith.constant 0 : i32
    %c0_i32_1 = arith.constant 0 : i32
    return %c0_i32, %c0_i32_0 : i32, i32
  }
  func.func @transform_2(%arg0: i32) -> (i32, i32) {
    %c0_i32 = arith.constant 0 : i32
    %c0_i32_0 = arith.constant 0 : i32
    %c0_i32_1 = arith.constant 0 : i32
    return %c0_i32, %c0_i32_0 : i32, i32
  }
  func.func @transform_3(%arg0: i32) -> (i32, i32) {
    %c0_i32 = arith.constant 0 : i32
    %c0_i32_0 = arith.constant 0 : i32
    %c0_i32_1 = arith.constant 0 : i32
    return %c0_i32, %c0_i32_0 : i32, i32
  }
  func.func @transform_4(%arg0: i32) -> (i32, i32) {
    %c0_i32 = arith.constant 0 : i32
    %c0_i32_0 = arith.constant 0 : i32
    %c0_i32_1 = arith.constant 0 : i32
    return %c0_i32, %c0_i32_0 : i32, i32
  }
  func.func @transform_5(%arg0: i32) -> (i32, i32) {
    %c0_i32 = arith.constant 0 : i32
    %c0_i32_0 = arith.constant 0 : i32
    %c0_i32_1 = arith.constant 0 : i32
    return %c0_i32, %c0_i32_0 : i32, i32
  }
  func.func @transform_6(%arg0: i32) -> (i32, i32, i32) {
    %c0_i32 = arith.constant 0 : i32
    %c0_i32_0 = arith.constant 0 : i32
    %c0_i32_1 = arith.constant 0 : i32
    %c0_i32_2 = arith.constant 0 : i32
    return %c0_i32, %c0_i32_0, %c0_i32_1 : i32, i32, i32
  }
}

</mosaic_0001>

<bundles_post_ra>
// kernel: encoder_forward.1
= control target key start
LH: loop header
LB: loop body
LE: loop exit
PB: predicated region body
PF: predicated region fallthrough
CT: control target
= control target key end

     0   :  { %vm40_vm0 = vcmask 130048   ;;  %v1934_v5 = vmov 0.0|0.0   ;;  %vm1935_vm1 = vmmov 0   ;;  %v1936_v9 = vmov 0.0   ;;  %s2253_s1 = inlined_call_operand.vmem [shape: f32[16,32], index: 1, kind: input, shape index: {}]   ;;  %s2254_s0 = inlined_call_operand.vmem [shape: f32[64,16], index: 0, kind: input, shape index: {}]   ;;  %s2255_s4 = inlined_call_operand.vmem [shape: f32[64,32], index: 4, kind: input, shape index: {}]   ;;  %s2256_s3 = inlined_call_operand.vmem [shape: f32[1,32], index: 3, kind: input, shape index: {}]   ;;  %s2257_s2 = inlined_call_operand.vmem [shape: f32[32,32], index: 2, kind: input, shape index: {}]   ;;  %s2258_s5 = inlined_call_operand.vmem [shape: f32[1,32], index: 5, kind: input, shape index: {}]   ;;  %s2259_s6 = inlined_call_operand.vmem [shape: f32[2,8,32], index: 6, kind: output, shape index: {}]  }
   0x1   :  { %v31_v0 = vld [vmem:[%s2253_s1] sm:$0xff]  ;;  %v32_v1 = vld [vmem:[%s2253_s1 + $0x8] sm:$0xff]  ;;  %1760 = vmatprep.subr.bf16.mxu0 %v1934_v5  ;;  %v185_v8 = vld [vmem:[%s2255_s4 + $0x10] sm:$0xff]  ;;  %1543 = vmatprep.mubr.msk.f32.mxu0 %vm1935_vm1, %v1936_v9  ;;  %vm170_vm2 = vcmask 261120   ;;  %vm201_vm3 = vcmask 523264  }
   0x2   :  { %v23_v2 = vld [vmem:[%s2254_s0] sm:$0xff]  ;;  %v1756_v3 = vpack.c.bf16 %v32_v1, %v31_v0  ;;  %v24_v4 = vld [vmem:[%s2254_s0 + $0x8] sm:$0xff]  ;;  %v186_v11 = vld [vmem:[%s2255_s4 + $0x18] sm:$0xff] }
   0x3   :  { %1515 = vmatprep.mubr.msk.f32.mxu1 %vm40_vm0, %v23_v2  ;;  %v183_v6 = vld [vmem:[%s2255_s4] sm:$0xff]  ;;  %v184_v7 = vld [vmem:[%s2255_s4 + $0x8] sm:$0xff]  ;;  %v2006_v12 = vpack.c.bf16 %v186_v11, %v185_v8  ;;  %v189_v16 = vld [vmem:[%s2255_s4 + $0x30] sm:$0xff] }
   0x4   :  { %1757 = vmatprep.subr.bf16.mxu1 %v1756_v3  ;;  %v1999_v10 = vpack.c.bf16 %v184_v7, %v183_v6  ;;  %v187_v13 = vld [vmem:[%s2255_s4 + $0x20] sm:$0xff]  ;;  %v188_v14 = vld [vmem:[%s2255_s4 + $0x28] sm:$0xff]  ;;  %v190_v17 = vld [vmem:[%s2255_s4 + $0x38] sm:$0xff] }
   0x5   :  { %1759 = vmatpush3.bf16.msra.mxu1 %v1756_v3  ;;  %v2018_v15 = vpack.c.bf16 %v188_v14, %v187_v13  ;;  %v2030_v18 = vpack.c.bf16 %v190_v17, %v189_v16  ;;  %v2042_v19 = vld [vmem:[%s2256_s3] ss:$0 sm:$0xff]  ;;  %v180_v26 = vld [vmem:[%s2257_s2 + $0x8] sm:$0xff]  ;;  %v181_v29 = vld [vmem:[%s2257_s2 + $0x10] sm:$0xff] }
   0x6   :  { %1778 = vmatprep.subr.bf16.mxu1 %v1934_v5  ;;  %1762 = vmatpush3.bf16.msra.mxu0 %v1999_v10  ;;  %v179_v25 = vld [vmem:[%s2257_s2] sm:$0xff]  ;;  %v182_v30 = vld [vmem:[%s2257_s2 + $0x18] sm:$0xff]  ;;  %v25_v33 = vld [vmem:[%s2254_s0 + $0x10] sm:$0xff] }
   0x7   :  { %1763 = vmatprep.subr.bf16.mxu0 %v1934_v5  ;;  %v2054_v27 = vpack.c.bf16 %v180_v26, %v179_v25  ;;  %v2065_v32 = vpack.c.bf16 %v182_v30, %v181_v29  ;;  %v26_v34 = vld [vmem:[%s2254_s0 + $0x18] sm:$0xff]  ;;  %v27_v35 = vld [vmem:[%s2254_s0 + $0x20] sm:$0xff]  ;;  %v28_v36 = vld [vmem:[%s2254_s0 + $0x28] sm:$0xff] }
   0x8   :  { %1516 = vmatmul.mubr.msk.f32.vlgmr.msra.gmra.mrb[0].mxu1 %vm40_vm0, %v24_v4  ;;  %v29_v37 = vld [vmem:[%s2254_s0 + $0x30] sm:$0xff]  ;;  %v30_v38 = vld [vmem:[%s2254_s0 + $0x38] sm:$0xff]  ;;  %v2108_v39 = vld [vmem:[%s2258_s5] ss:$0 sm:$0xff]  ;;  %s1937_s0 = smov 32  }
   0x9   :  { %1780 = vmatpush3.bf16.msra.mxu1 %v1999_v10  ;;  %1518 = vmatprep.mubr.msk.f32.mxu1 %vm40_vm0, %v25_v33 }
   0xa   :  { %1781 = vmatprep.subr.bf16.mxu1 %v1934_v5  ;;  %1765 = vmatpush3.bf16.msra.mxu0 %v2006_v12 }
   0xb   :  { %1766 = vmatprep.subr.bf16.mxu0 %v1934_v5 }
   0xc   :  { %1519 = vmatmul.mubr.msk.f32.gmra.mrb[2].mxu1 %vm40_vm0, %v26_v34 }
   0xd   :  { %1783 = vmatpush3.bf16.msra.mxu1 %v2006_v12  ;;  %1521 = vmatprep.mubr.msk.f32.mxu1 %vm40_vm0, %v27_v35 }
   0xe   :  { %1784 = vmatprep.subr.bf16.mxu1 %v1934_v5  ;;  %1768 = vmatpush3.bf16.msra.mxu0 %v2018_v15 }
   0xf   :  { %1769 = vmatprep.subr.bf16.mxu0 %v1934_v5 }
  0x10   :  { %1522 = vmatmul.mubr.msk.f32.gmra.mrb[4].mxu1 %vm40_vm0, %v28_v36 }
  0x11   :  { %1786 = vmatpush3.bf16.msra.mxu1 %v2018_v15  ;;  %1524 = vmatprep.mubr.msk.f32.mxu1 %vm40_vm0, %v29_v37 }
  0x12   :  { %1787 = vmatprep.subr.bf16.mxu1 %v1934_v5  ;;  %1771 = vmatpush3.bf16.msra.mxu0 %v2030_v18 }
  0x13   :  { %1772 = vmatprep.subr.bf16.mxu0 %v1934_v5 }
  0x14   :  { %1525 = vmatmul.mubr.msk.f32.gmra.mrb[6].mxu1 %vm40_vm0, %v30_v38 }
  0x15   :  { %1789 = vmatpush3.bf16.msra.mxu1 %v2030_v18  ;;  %1573 = vmatprep.mubr.msk.f32.mxu1 %vm1935_vm1, %v1936_v9 }
  0x16   :  { %1808 = vmatprep.subr.bf16.mxu1 %v1934_v5 }
  0xdb   :  { %v1517_v20 = vpop.f32.mrb[0].mxu1 }
  0xdc   :  { %v137_v21 = vadd.f32 %v1517_v20, %v2042_v19  ;;  %v131_v22 = vpop.f32.mrb[1].mxu1 }
  0xdd   :  { %v132_v23 = vadd.f32 %v2042_v19, %v131_v22 }
  0xde   :  { %172 = vst.msk [vmem:[#allocation2 + $0x8] sm:$0xff] %vm170_vm2, %v137_v21 }
  0xdf   :  { %171 = vst.msk [vmem:[#allocation2] sm:$0xff] %vm170_vm2, %v132_v23  ;;  %v1520_v49 = vpop.f32.mrb[2].mxu1 }
  0xe0   :  { %v147_v50 = vadd.f32 %v1520_v49, %v2042_v19  ;;  %v141_v51 = vpop.f32.mrb[3].mxu1 }
  0xe1   :  { %v142_v52 = vadd.f32 %v2042_v19, %v141_v51 }
  0xe2   :  { %174 = vst.msk [vmem:[#allocation2 + $0x18] sm:$0xff] %vm170_vm2, %v147_v50 }
  0xe3   :  { %173 = vst.msk [vmem:[#allocation2 + $0x10] sm:$0xff] %vm170_vm2, %v142_v52  ;;  %v1523_v53 = vpop.f32.mrb[4].mxu1 }
  0xe4   :  { %v157_v54 = vadd.f32 %v1523_v53, %v2042_v19  ;;  %v151_v55 = vpop.f32.mrb[5].mxu1 }
  0xe5   :  { %v276_v43 = vld [vmem:[#allocation2 + $0x8] sm:$0xff]  ;;  %v152_v56 = vadd.f32 %v2042_v19, %v151_v55 }
  0xe6   :  { %v192_v24 = vld [vmem:[#allocation2] sm:$0xff]  ;;  %176 = vst.msk [vmem:[#allocation2 + $0x28] sm:$0xff] %vm170_vm2, %v157_v54 }
  0xe7   :  { %1902 = vtanh.f32 %v192_v24  ;;  %v1526_v57 = vpop.f32.mrb[6].mxu1  ;;  %175 = vst.msk [vmem:[#allocation2 + $0x20] sm:$0xff] %vm170_vm2, %v152_v56 }
  0xe8   :  { %v167_v58 = vadd.f32 %v1526_v57, %v2042_v19  ;;  %v161_v59 = vpop.f32.mrb[7].mxu1 }
  0xe9   :  { %v162_v60 = vadd.f32 %v2042_v19, %v161_v59  ;;  %v586_v14 = vld [vmem:[#allocation2 + $0x18] sm:$0xff] }
  0xea   :  { %178 = vst.msk [vmem:[#allocation2 + $0x38] sm:$0xff] %vm170_vm2, %v167_v58  ;;  %v431_v63 = vld [vmem:[#allocation2 + $0x10] sm:$0xff] }
  0xeb   :  { %177 = vst.msk [vmem:[#allocation2 + $0x30] sm:$0xff] %vm170_vm2, %v162_v60 }
  0xf1   :  { %v1903_v28 = vpop.eup %1902 }
  0xf2   :  { %v194_v31 = vsel %vm170_vm2, %v1903_v28, 0.0  ;;  %v1051_v52 = vld [vmem:[#allocation2 + $0x30] sm:$0xff] }
  0xf3   :  { %1544 = vmatmul.mubr.msk.f32.vlgmr.msra.gmra.mrb[0].mxu0 %vm201_vm3, %v194_v31 }
  0xf4   :  { %1774 = vmatpush3.bf16.msra.mxu0 %v2054_v27  ;;  %1554 = vmatprep.mubr.msk.f32.mxu0 %vm1935_vm1, %v1936_v9 }
  0xf5   :  { %1775 = vmatprep.subr.bf16.mxu0 %v1934_v5 }
  0xf8   :  { %1777 = vmatpush3.bf16.msra.mxu0 %v2065_v32 }
  0xf9   :  { %1790 = vmatprep.subr.bf16.mxu0 %v1934_v5 }
  0xfb   :  { %1555 = vmatmul.mubr.msk.f32.vlgmr.msra.gmra.mrb[2].mxu0 %vm170_vm2, %v1903_v28  ;;  %v741_v28 = vld [vmem:[#allocation2 + $0x20] sm:$0xff] }
  0xfc   :  { %1792 = vmatpush3.bf16.msra.mxu0 %v2054_v27  ;;  %1584 = vmatprep.mubr.msk.f32.mxu0 %vm1935_vm1, %v1936_v9 }
  0xfd   :  { %1793 = vmatprep.subr.bf16.mxu0 %v1934_v5 }
 0x100   :  { %1795 = vmatpush3.bf16.msra.mxu0 %v2065_v32 }
 0x101   :  { %1796 = vmatprep.subr.bf16.mxu0 %v1934_v5 }
 0x1c6   :  { %v271_v40 = vpop.f32.mrb[0].mxu0 }
 0x1c7   :  { %v272_v41 = vadd.f32 %v2108_v39, %v271_v40  ;;  %v1545_v42 = vpop.f32.mrb[1].mxu0 }
 0x1c9   :  { %1904 = vtanh.f32 %v272_v41  ;;  %v896_v41 = vld [vmem:[#allocation2 + $0x28] sm:$0xff] }
 0x1ce   :  { %v346_v44 = vpop.f32.mrb[2].mxu0 }
 0x1cf   :  { %v350_v45 = vadd.f32 %v346_v44, %v276_v43  ;;  %v1556_v46 = vpop.f32.mrb[3].mxu0 }
 0x1d1   :  { %1906 = vtanh.f32 %v350_v45 }
 0x1d3   :  { %v1905_v47 = vpop.eup %1904 }
 0x1d4   :  { %353 = vrot.lane.b32.xlu0 %v1905_v47, %s1937_s0 }
 0x1db   :  { %v1907_v48 = vpop.eup %1906 }
 0x1dc   :  { %1585 = vmatmul.mubr.msk.f32.vlgmr.msra.gmra.mrb[4].mxu0 %vm170_vm2, %v1907_v48 }
 0x1dd   :  { %1798 = vmatpush3.bf16.msra.mxu0 %v1999_v10  ;;  %1603 = vmatprep.mubr.msk.f32.mxu0 %vm1935_vm1, %v1936_v9 }
 0x1de   :  { %1799 = vmatprep.subr.bf16.mxu0 %v1934_v5 }
 0x1e1   :  { %1801 = vmatpush3.bf16.msra.mxu0 %v2006_v12 }
 0x1e2   :  { %1802 = vmatprep.subr.bf16.mxu0 %v1934_v5 }
 0x1e5   :  { %1804 = vmatpush3.bf16.msra.mxu0 %v2018_v15 }
 0x1e6   :  { %1805 = vmatprep.subr.bf16.mxu0 %v1934_v5 }
 0x1e9   :  { %1807 = vmatpush3.bf16.msra.mxu0 %v2030_v18 }
 0x1ea   :  { %1826 = vmatprep.subr.bf16.mxu0 %v1934_v5 }
 0x246   :  { %v354_v61 = vpop.permute.xlu0 %353 }
 0x247   :  { %v356_v62 = vsel %vm170_vm2, %v1907_v48, %v354_v61 }
 0x248   :  { %1574 = vmatmul.mubr.msk.f32.vlgmr.msra.gmra.mrb[8].mxu1 %vm201_vm3, %v356_v62 }
 0x249   :  { %1810 = vmatpush3.bf16.msra.mxu1 %v2054_v27  ;;  %1614 = vmatprep.mubr.msk.f32.mxu1 %vm1935_vm1, %v1936_v9 }
 0x24a   :  { %1811 = vmatprep.subr.bf16.mxu1 %v1934_v5 }
 0x24d   :  { %1813 = vmatpush3.bf16.msra.mxu1 %v2065_v32 }
 0x24e   :  { %1814 = vmatprep.subr.bf16.mxu1 %v1934_v5 }
 0x2af   :  { %v501_v0 = vpop.f32.mrb[4].mxu0 }
 0x2b0   :  { %v505_v1 = vadd.f32 %v501_v0, %v431_v63  ;;  %v1586_v2 = vpop.f32.mrb[5].mxu0 }
 0x2b2   :  { %1908 = vtanh.f32 %v505_v1 }
 0x2bc   :  { %v1909_v3 = vpop.eup %1908 }
 0x2bd   :  { %1615 = vmatmul.mubr.msk.f32.vlgmr.msra.gmra.mrb[10].mxu1 %vm170_vm2, %v1909_v3 }
 0x2be   :  { %1816 = vmatpush3.bf16.msra.mxu1 %v1999_v10  ;;  %1633 = vmatprep.mubr.msk.f32.mxu1 %vm1935_vm1, %v1936_v9 }
 0x2bf   :  { %1817 = vmatprep.subr.bf16.mxu1 %v1934_v5 }
 0x2c2   :  { %1819 = vmatpush3.bf16.msra.mxu1 %v2006_v12 }
 0x2c3   :  { %1820 = vmatprep.subr.bf16.mxu1 %v1934_v5 }
 0x2c6   :  { %1822 = vmatpush3.bf16.msra.mxu1 %v2018_v15 }
 0x2c7   :  { %1823 = vmatprep.subr.bf16.mxu1 %v1934_v5 }
 0x2ca   :  { %1825 = vmatpush3.bf16.msra.mxu1 %v2030_v18 }
 0x2cb   :  { %1844 = vmatprep.subr.bf16.mxu1 %v1934_v5 }
 0x31b   :  { %v426_v4 = vpop.f32.mrb[8].mxu1 }
 0x31c   :  { %v427_v6 = vadd.f32 %v2108_v39, %v426_v4  ;;  %v1575_v7 = vpop.f32.mrb[9].mxu1 }
 0x31e   :  { %1910 = vtanh.f32 %v427_v6 }
 0x328   :  { %v1911_v8 = vpop.eup %1910 }
 0x329   :  { %508 = vrot.lane.b32.xlu0 %v1911_v8, %s1937_s0 }
 0x390   :  { %v656_v11 = vpop.f32.mrb[10].mxu1 }
 0x391   :  { %v1616_v13 = vpop.f32.mrb[11].mxu1  ;;  %v660_v16 = vadd.f32 %v656_v11, %v586_v14 }
 0x393   :  { %1912 = vtanh.f32 %v660_v16 }
 0x39b   :  { %v509_v17 = vpop.permute.xlu0 %508 }
 0x39c   :  { %v511_v19 = vsel %vm170_vm2, %v1909_v3, %v509_v17 }
 0x39d   :  { %1604 = vmatmul.mubr.msk.f32.vlgmr.msra.gmra.mrb[6].mxu0 %vm201_vm3, %v511_v19  ;;  %v1913_v20 = vpop.eup %1912 }
 0x39e   :  { %1828 = vmatpush3.bf16.msra.mxu0 %v2054_v27  ;;  %1644 = vmatprep.mubr.msk.f32.mxu0 %vm1935_vm1, %v1936_v9 }
 0x39f   :  { %1829 = vmatprep.subr.bf16.mxu0 %v1934_v5 }
 0x3a2   :  { %1831 = vmatpush3.bf16.msra.mxu0 %v2065_v32 }
 0x3a3   :  { %1832 = vmatprep.subr.bf16.mxu0 %v1934_v5 }
 0x3a5   :  { %1645 = vmatmul.mubr.msk.f32.vlgmr.msra.gmra.mrb[8].mxu0 %vm170_vm2, %v1913_v20 }
 0x3a6   :  { %1834 = vmatpush3.bf16.msra.mxu0 %v1999_v10  ;;  %1663 = vmatprep.mubr.msk.f32.mxu0 %vm1935_vm1, %v1936_v9 }
 0x3a7   :  { %1835 = vmatprep.subr.bf16.mxu0 %v1934_v5 }
 0x3aa   :  { %1837 = vmatpush3.bf16.msra.mxu0 %v2006_v12 }
 0x3ab   :  { %1838 = vmatprep.subr.bf16.mxu0 %v1934_v5 }
 0x3ae   :  { %1840 = vmatpush3.bf16.msra.mxu0 %v2018_v15 }
 0x3af   :  { %1841 = vmatprep.subr.bf16.mxu0 %v1934_v5 }
 0x3b2   :  { %1843 = vmatpush3.bf16.msra.mxu0 %v2030_v18 }
 0x3b3   :  { %1862 = vmatprep.subr.bf16.mxu0 %v1934_v5 }
 0x470   :  { %v581_v21 = vpop.f32.mrb[6].mxu0 }
 0x471   :  { %v582_v22 = vadd.f32 %v2108_v39, %v581_v21  ;;  %v1605_v23 = vpop.f32.mrb[7].mxu0 }
 0x473   :  { %1914 = vtanh.f32 %v582_v22 }
 0x478   :  { %v811_v24 = vpop.f32.mrb[8].mxu0 }
 0x479   :  { %v1646_v25 = vpop.f32.mrb[9].mxu0  ;;  %v815_v29 = vadd.f32 %v811_v24, %v741_v28 }
 0x47b   :  { %1916 = vtanh.f32 %v815_v29 }
 0x47d   :  { %v1915_v26 = vpop.eup %1914 }
 0x47e   :  { %663 = vrot.lane.b32.xlu1 %v1915_v26, %s1937_s0 }
 0x485   :  { %v1917_v33 = vpop.eup %1916 }
 0x4f0   :  { %v664_v30 = vpop.permute.xlu1 %663 }
 0x4f1   :  { %v666_v31 = vsel %vm170_vm2, %v1913_v20, %v664_v30 }
 0x4f2   :  { %1634 = vmatmul.mubr.msk.f32.vlgmr.msra.gmra.mrb[12].mxu1 %vm201_vm3, %v666_v31 }
 0x4f3   :  { %1846 = vmatpush3.bf16.msra.mxu1 %v2054_v27  ;;  %1674 = vmatprep.mubr.msk.f32.mxu1 %vm1935_vm1, %v1936_v9 }
 0x4f4   :  { %1847 = vmatprep.subr.bf16.mxu1 %v1934_v5 }
 0x4f7   :  { %1849 = vmatpush3.bf16.msra.mxu1 %v2065_v32 }
 0x4f8   :  { %1850 = vmatprep.subr.bf16.mxu1 %v1934_v5 }
 0x4fa   :  { %1675 = vmatmul.mubr.msk.f32.vlgmr.msra.gmra.mrb[14].mxu1 %vm170_vm2, %v1917_v33 }
 0x4fb   :  { %1852 = vmatpush3.bf16.msra.mxu1 %v1999_v10  ;;  %1693 = vmatprep.mubr.msk.f32.mxu1 %vm1935_vm1, %v1936_v9 }
 0x4fc   :  { %1853 = vmatprep.subr.bf16.mxu1 %v1934_v5 }
 0x4ff   :  { %1855 = vmatpush3.bf16.msra.mxu1 %v2006_v12 }
 0x500   :  { %1856 = vmatprep.subr.bf16.mxu1 %v1934_v5 }
 0x503   :  { %1858 = vmatpush3.bf16.msra.mxu1 %v2018_v15 }
 0x504   :  { %1859 = vmatprep.subr.bf16.mxu1 %v1934_v5 }
 0x507   :  { %1861 = vmatpush3.bf16.msra.mxu1 %v2030_v18 }
 0x508   :  { %1880 = vmatprep.subr.bf16.mxu1 %v1934_v5 }
 0x5c5   :  { %v736_v34 = vpop.f32.mrb[12].mxu1 }
 0x5c6   :  { %v737_v35 = vadd.f32 %v2108_v39, %v736_v34  ;;  %v1635_v36 = vpop.f32.mrb[13].mxu1 }
 0x5c8   :  { %1918 = vtanh.f32 %v737_v35 }
 0x5cd   :  { %v966_v37 = vpop.f32.mrb[14].mxu1 }
 0x5ce   :  { %v1676_v38 = vpop.f32.mrb[15].mxu1  ;;  %v970_v42 = vadd.f32 %v966_v37, %v896_v41 }
 0x5d0   :  { %1920 = vtanh.f32 %v970_v42 }
 0x5d2   :  { %v1919_v40 = vpop.eup %1918 }
 0x5d3   :  { %818 = vrot.lane.b32.xlu1 %v1919_v40, %s1937_s0 }
 0x5da   :  { %v1921_v45 = vpop.eup %1920 }
 0x645   :  { %v819_v43 = vpop.permute.xlu1 %818 }
 0x646   :  { %v821_v44 = vsel %vm170_vm2, %v1917_v33, %v819_v43 }
 0x647   :  { %1664 = vmatmul.mubr.msk.f32.vlgmr.msra.gmra.mrb[10].mxu0 %vm201_vm3, %v821_v44 }
 0x648   :  { %1864 = vmatpush3.bf16.msra.mxu0 %v2054_v27  ;;  %1704 = vmatprep.mubr.msk.f32.mxu0 %vm1935_vm1, %v1936_v9 }
 0x649   :  { %1865 = vmatprep.subr.bf16.mxu0 %v1934_v5 }
 0x64c   :  { %1867 = vmatpush3.bf16.msra.mxu0 %v2065_v32 }
 0x64d   :  { %1868 = vmatprep.subr.bf16.mxu0 %v1934_v5 }
 0x64f   :  { %1705 = vmatmul.mubr.msk.f32.vlgmr.msra.gmra.mrb[12].mxu0 %vm170_vm2, %v1921_v45 }
 0x650   :  { %1870 = vmatpush3.bf16.msra.mxu0 %v1999_v10  ;;  %1723 = vmatprep.mubr.msk.f32.mxu0 %vm1935_vm1, %v1936_v9 }
 0x651   :  { %1871 = vmatprep.subr.bf16.mxu0 %v1934_v5 }
 0x654   :  { %1873 = vmatpush3.bf16.msra.mxu0 %v2006_v12 }
 0x655   :  { %1874 = vmatprep.subr.bf16.mxu0 %v1934_v5 }
 0x658   :  { %1876 = vmatpush3.bf16.msra.mxu0 %v2018_v15 }
 0x659   :  { %1877 = vmatprep.subr.bf16.mxu0 %v1934_v5 }
 0x65c   :  { %1879 = vmatpush3.bf16.msra.mxu0 %v2030_v18 }
 0x71a   :  { %v891_v46 = vpop.f32.mrb[10].mxu0 }
 0x71b   :  { %v892_v47 = vadd.f32 %v2108_v39, %v891_v46  ;;  %v1665_v48 = vpop.f32.mrb[11].mxu0 }
 0x71d   :  { %1922 = vtanh.f32 %v892_v47 }
 0x722   :  { %v1121_v49 = vpop.f32.mrb[12].mxu0 }
 0x723   :  { %v1706_v50 = vpop.f32.mrb[13].mxu0  ;;  %v1125_v53 = vadd.f32 %v1121_v49, %v1051_v52 }
 0x725   :  { %1924 = vtanh.f32 %v1125_v53 }
 0x727   :  { %v1923_v51 = vpop.eup %1922 }
 0x728   :  { %973 = vrot.lane.b32.xlu0 %v1923_v51, %s1937_s0 }
 0x72f   :  { %v1925_v56 = vpop.eup %1924 }
 0x79a   :  { %v974_v54 = vpop.permute.xlu0 %973 }
 0x79b   :  { %v976_v55 = vsel %vm170_vm2, %v1921_v45, %v974_v54 }
 0x79c   :  { %1694 = vmatmul.mubr.msk.f32.vlgmr.msra.gmra.mrb[16].mxu1 %vm201_vm3, %v976_v55 }
 0x79d   :  { %1882 = vmatpush3.bf16.msra.mxu1 %v2054_v27  ;;  %1734 = vmatprep.mubr.msk.f32.mxu1 %vm1935_vm1, %v1936_v9 }
 0x79e   :  { %1883 = vmatprep.subr.bf16.mxu1 %v1934_v5 }
 0x7a1   :  { %1885 = vmatpush3.bf16.msra.mxu1 %v2065_v32 }
 0x7a2   :  { %1886 = vmatprep.subr.bf16.mxu1 %v1934_v5 }
 0x7a4   :  { %1735 = vmatmul.mubr.msk.f32.vlgmr.msra.gmra.mrb[18].mxu1 %vm170_vm2, %v1925_v56 }
 0x7a5   :  { %1888 = vmatpush3.bf16.msra.mxu1 %v1999_v10  ;;  %1753 = vmatprep.mubr.msk.f32.mxu1 %vm1935_vm1, %v1936_v9  ;;  %v1206_v10 = vld [vmem:[#allocation2 + $0x38] sm:$0xff] }
 0x7a6   :  { %1889 = vmatprep.subr.bf16.mxu1 %v1934_v5 }
 0x7a9   :  { %1891 = vmatpush3.bf16.msra.mxu1 %v2006_v12 }
 0x7aa   :  { %1892 = vmatprep.subr.bf16.mxu1 %v1934_v5 }
 0x7ad   :  { %1894 = vmatpush3.bf16.msra.mxu1 %v2018_v15 }
 0x7ae   :  { %1895 = vmatprep.subr.bf16.mxu1 %v1934_v5 }
 0x7b1   :  { %1897 = vmatpush3.bf16.msra.mxu1 %v2030_v18 }
 0x86f   :  { %v1046_v27 = vpop.f32.mrb[16].mxu1 }
 0x870   :  { %v1047_v32 = vadd.f32 %v2108_v39, %v1046_v27  ;;  %v1695_v57 = vpop.f32.mrb[17].mxu1 }
 0x872   :  { %1926 = vtanh.f32 %v1047_v32 }
 0x877   :  { %v1276_v58 = vpop.f32.mrb[18].mxu1 }
 0x878   :  { %v1280_v9 = vadd.f32 %v1276_v58, %v1206_v10  ;;  %v1736_v59 = vpop.f32.mrb[19].mxu1 }
 0x87a   :  { %1928 = vtanh.f32 %v1280_v9 }
 0x87c   :  { %v1927_v60 = vpop.eup %1926 }
 0x87d   :  { %1128 = vrot.lane.b32.xlu1 %v1927_v60, %s1937_s0 }
 0x884   :  { %v1929_v12 = vpop.eup %1928 }
 0x885   :  { %1361 = vst.msk [vmem:[%s2259_s6] sm:$0xff] %vm170_vm2, %v1929_v12 }
 0x8ef   :  { %v1129_v5 = vpop.permute.xlu1 %1128 }
 0x8f0   :  { %v1131_v15 = vsel %vm170_vm2, %v1925_v56, %v1129_v5 }
 0x8f1   :  { %1724 = vmatmul.mubr.msk.f32.vlgmr.msra.gmra.mrb[14].mxu0 %vm201_vm3, %v1131_v15 }
 0x9c4   :  { %v1201_v18 = vpop.f32.mrb[14].mxu0 }
 0x9c5   :  { %v1202_v61 = vadd.f32 %v2108_v39, %v1201_v18  ;;  %v1725_v62 = vpop.f32.mrb[15].mxu0 }
 0x9c7   :  { %1930 = vtanh.f32 %v1202_v61 }
 0x9d1   :  { %v1931_v63 = vpop.eup %1930 }
 0x9d2   :  { %1283 = vrot.lane.b32.xlu0 %v1931_v63, %s1937_s0 }
 0xa44   :  { %v1284_v0 = vpop.permute.xlu0 %1283 }
 0xa45   :  { %v1286_v1 = vsel %vm170_vm2, %v1929_v12, %v1284_v0 }
 0xa46   :  { %1754 = vmatmul.mubr.msk.f32.vlgmr.msra.gmra.mrb[20].mxu1 %vm201_vm3, %v1286_v1 }
 0xb19   :  { %v1356_v2 = vpop.f32.mrb[20].mxu1 }
 0xb1a   :  { %v1357_v3 = vadd.f32 %v2108_v39, %v1356_v2  ;;  %v1755_v4 = vpop.f32.mrb[21].mxu1 }
 0xb1c   :  { %1932 = vtanh.f32 %v1357_v3 }
 0xb26   :  { %v1933_v6 = vpop.eup %1932 }
 0xb27   :  { %1393 = vst.msk [vmem:[%s2259_s6 + $0x8] sm:$0xff] %vm170_vm2, %v1933_v6 }

</bundles_post_ra>
